<compile_context>
chip_gen: v6e
topology: v6e:2x2x1
jax: 0.10.0
libtpu: 0.0.40
codegen_flags: <defaults>
</compile_context>

<pallas_src>
import functools
import math

import jax
import jax.numpy as jnp
from jax.experimental import pallas as pl
from jax.experimental.pallas import tpu as pltpu

BN_EPS = 1e-5


# ---------------------- tiled grouped matmul (conv core) --------------------

def _pick_tile(dim, cap, quantum):
    """Largest tile <= cap that divides dim and is a multiple of `quantum`;
    the full dim if it already fits under cap (full dims always satisfy the
    (8,128) BlockSpec rule)."""
    if dim <= cap:
        return dim
    best = dim  # fallback: full dim (never hit for the shapes in this model)
    for t in range(quantum, cap + 1, quantum):
        if dim % t == 0:
            best = t
    return best


def _gmm_kernel_multi_k(x_ref, w_ref, b_ref, *rest, relu, has_res):
    """Accumulating path: grid has >1 step along the trailing K axis."""
    if has_res:
        res_ref, o_ref, acc_ref = rest
    else:
        o_ref, acc_ref = rest

    k = pl.program_id(3)

    @pl.when(k == 0)
    def _():
        acc_ref[...] = jnp.zeros_like(acc_ref)

    acc_ref[...] += jnp.dot(x_ref[0], w_ref[0],
                            preferred_element_type=jnp.float32)

    @pl.when(k == pl.num_programs(3) - 1)
    def _():
        out = acc_ref[...] + b_ref[0]
        if has_res:
            out = out + res_ref[0]
        if relu:
            out = jnp.maximum(out, 0.0)
        o_ref[0] = out


def _gmm_kernel_one_k(x_ref, w_ref, b_ref, *rest, relu, has_res):
    """Single K step: no accumulator scratch, dot -> fused epilogue -> out."""
    if has_res:
        res_ref, o_ref = rest
    else:
        (o_ref,) = rest
    out = jnp.dot(x_ref[0], w_ref[0],
                  preferred_element_type=jnp.float32) + b_ref[0]
    if has_res:
        out = out + res_ref[0]
    if relu:
        out = jnp.maximum(out, 0.0)
    o_ref[0] = out


def grouped_matmul(x, w, b, relu=False, residual=None):
    """(G,M,K) @ (G,K,N) + b[G,1,N] (+ residual, + ReLU) -> (G,M,N) f32.

    x/w are bf16 (MXU native); bias, residual, accumulator, output stay f32.
    """
    G, M, K = x.shape
    N = w.shape[2]
    tm = _pick_tile(M, 512, 8)
    tn = _pick_tile(N, 512, 128)
    tk = _pick_tile(K, 2304, 128)
    nk = K // tk
    grid = (G, M // tm, N // tn, nk)

    has_res = residual is not None
    in_specs = [
        pl.BlockSpec((1, tm, tk), lambda g, i, j, k: (g, i, k)),
        pl.BlockSpec((1, tk, tn), lambda g, i, j, k: (g, k, j)),
        pl.BlockSpec((1, 1, tn), lambda g, i, j, k: (g, 0, j)),
    ]
    operands = [x, w, b]
    if has_res:
        in_specs.append(pl.BlockSpec((1, tm, tn), lambda g, i, j, k: (g, i, j)))
        operands.append(residual)

    if nk == 1:
        kernel = functools.partial(_gmm_kernel_one_k, relu=relu,
                                   has_res=has_res)
        scratch_shapes = []
    else:
        kernel = functools.partial(_gmm_kernel_multi_k, relu=relu,
                                   has_res=has_res)
        scratch_shapes = [pltpu.VMEM((tm, tn), jnp.float32)]

    return pl.pallas_call(
        kernel,
        out_shape=jax.ShapeDtypeStruct((G, M, N), jnp.float32),
        grid=grid,
        in_specs=in_specs,
        out_specs=pl.BlockSpec((1, tm, tn), lambda g, i, j, k: (g, i, j)),
        scratch_shapes=scratch_shapes,
        compiler_params=pltpu.CompilerParams(
            dimension_semantics=("parallel", "parallel", "parallel",
                                 "arbitrary")),
    )(*operands)


# ------------------------- softmax2d masking kernel -------------------------

def _softmax_mask_kernel(seg_ref, img_ref, o_ref):
    # Lane-dense layout: pixels on the lane axis, 4 seg channels as rows.
    s = seg_ref[...]                                   # (4, P)
    m = jnp.maximum(jnp.maximum(s[0:1], s[1:2]),
                    jnp.maximum(s[2:3], s[3:4]))
    e = jnp.exp(s - m)
    inv = 1.0 / (e[0:1] + e[1:2] + e[2:3] + e[3:4])
    img = img_ref[...]                                 # (3, P)
    for g in range(3):                                 # 1:trunk 2:f_leg 3:h_leg
        o_ref[g] = img * (e[g + 1:g + 2] * inv)


def softmax_mask(seg_t, img_t):
    S, P = seg_t.shape
    C = img_t.shape[0]
    return pl.pallas_call(
        _softmax_mask_kernel,
        out_shape=jax.ShapeDtypeStruct((3, C, P), jnp.float32),
        grid=(1,),
        in_specs=[pl.BlockSpec((S, P), lambda i: (0, 0)),
                  pl.BlockSpec((C, P), lambda i: (0, 0))],
        out_specs=pl.BlockSpec((3, C, P), lambda i: (0, 0, 0)),
    )(seg_t, img_t)


# ------------------------------ maxpool kernel ------------------------------

def _maxpool_s1_kernel(x_ref, o_ref, *, H, W):
    r = None
    for i in range(3):
        for j in range(3):
            v = x_ref[0, pl.ds(i, H), pl.ds(j, W), :]
            r = v if r is None else jnp.maximum(r, v)
    o_ref[0] = r


def maxpool_3x3_s2_grouped(x):
    """torch.nn.MaxPool2d(3, stride=2, padding=1) on (G,B,H,W,C)."""
    G, B, H, W, C = x.shape
    Ho = (H + 2 - 3) // 2 + 1
    Wo = (W + 2 - 3) // 2 + 1
    GB = G * B
    xp = jnp.pad(x.reshape(GB, H, W, C), ((0, 0), (1, 1), (1, 1), (0, 0)),
                 constant_values=-jnp.inf)
    # One read of the data: stride-1 3x3 window max in-kernel, then a cheap
    # XLA stride-2 subsample (avoids materializing 9 shifted HBM copies).
    dense = pl.pallas_call(
        functools.partial(_maxpool_s1_kernel, H=H, W=W),
        out_shape=jax.ShapeDtypeStruct((GB, H, W, C), jnp.float32),
        grid=(GB,),
        in_specs=[pl.BlockSpec((1, H + 2, W + 2, C), lambda n: (n, 0, 0, 0))],
        out_specs=pl.BlockSpec((1, H, W, C), lambda n: (n, 0, 0, 0)),
        compiler_params=pltpu.CompilerParams(
            dimension_semantics=("parallel",)),
    )(xp)
    out = dense[:, 0:2 * Ho:2, 0:2 * Wo:2, :]
    return out.reshape(G, B, Ho, Wo, C)


# ------------------------------ avgpool kernel ------------------------------

def _avgpool_kernel(x_ref, o_ref):
    o_ref[...] = jnp.mean(x_ref[...], axis=2)


def avgpool_grouped(x):  # (G, B, HW, C) -> (G, B, C)
    G, B, HW, C = x.shape
    return pl.pallas_call(
        _avgpool_kernel,
        out_shape=jax.ShapeDtypeStruct((G, B, C), jnp.float32),
        grid=(1,),
        in_specs=[pl.BlockSpec((G, B, HW, C), lambda i: (0, 0, 0, 0))],
        out_specs=pl.BlockSpec((G, B, C), lambda i: (0, 0, 0)),
    )(x)


# --------------------------- fused classifier MLP ---------------------------

def _classifier_kernel(f_ref, w1_ref, b1_ref, w2_ref, b2_ref, w3_ref, b3_ref,
                       o_ref):
    h = jnp.dot(f_ref[...], w1_ref[...],
                preferred_element_type=jnp.float32) + b1_ref[...]
    h = jnp.maximum(h, 0.0)
    h = jnp.dot(h.astype(jnp.bfloat16), w2_ref[...],
                preferred_element_type=jnp.float32) + b2_ref[...]
    h = jnp.maximum(h, 0.0)   # Dropout is identity in eval mode.
    o_ref[...] = (jnp.dot(h.astype(jnp.bfloat16), w3_ref[...],
                          preferred_element_type=jnp.float32) + b3_ref[...])


def classifier_forward(f, cp):
    B = f.shape[0]
    class_num = cp['fc3']['w'].shape[1]
    args = [f.astype(jnp.bfloat16),
            cp['fc1']['w'], cp['fc1']['b'].reshape(1, -1),
            cp['fc2']['w'], cp['fc2']['b'].reshape(1, -1),
            cp['fc3']['w'], cp['fc3']['b'].reshape(1, -1)]
    return pl.pallas_call(
        _classifier_kernel,
        out_shape=jax.ShapeDtypeStruct((B, class_num), jnp.float32),
        grid=(1,),
        in_specs=[pl.BlockSpec(a.shape, lambda i: (0, 0)) for a in args],
        out_specs=pl.BlockSpec((B, class_num), lambda i: (0, 0)),
    )(*args)


# ------------------------------- conv glue ---------------------------------

def im2col(x, kh, kw, stride, pad):
    # TODO(synk): patches are materialized by XLA; in-kernel shifted-window
    # accumulation would cut input HBM traffic ~k*k further.
    N, H, W, C = x.shape
    xp = jnp.pad(x, ((0, 0), (pad, pad), (pad, pad), (0, 0)))
    Ho = (H + 2 * pad - kh) // stride + 1
    Wo = (W + 2 * pad - kw) // stride + 1
    cols = []
    for i in range(kh):
        for j in range(kw):
            cols.append(xp[:, i:i + stride * Ho:stride,
                           j:j + stride * Wo:stride, :])
    patches = jnp.stack(cols, axis=3)                  # (N, Ho, Wo, kh*kw, C)
    return patches.reshape(N, Ho * Wo, kh * kw * C), Ho, Wo


def conv_bn_grouped(x, cp, stride, relu, residual=None):
    """Grouped conv+BN(+residual)(+ReLU): x is (G, B, H, W, Cin) f32."""
    G, B, H, W, Cin = x.shape
    k, pad = cp['k'], cp['pad']
    cout = cp['w'].shape[-1]
    patches, Ho, Wo = im2col(x.reshape(G * B, H, W, Cin), k, k, stride, pad)
    Kdim = patches.shape[-1]
    patches = patches.reshape(G, B * Ho * Wo, Kdim).astype(jnp.bfloat16)
    res = (residual.reshape(G, B * Ho * Wo, cout)
           if residual is not None else None)
    y = grouped_matmul(patches, cp['w'], cp['b'], relu=relu, residual=res)
    return y.reshape(G, B, Ho, Wo, cout)


# --------------------------- parameter building ----------------------------

def fold_bn(gamma, beta, mean, var):
    scale = gamma / jnp.sqrt(var + BN_EPS)
    return scale, beta - mean * scale


def make_bn(key, c):
    k1, k2, k3, k4 = jax.random.split(key, 4)
    gamma = 1.0 + 0.1 * jax.random.normal(k1, (c,), jnp.float32)
    beta = 0.1 * jax.random.normal(k2, (c,), jnp.float32)
    mean = 0.1 * jax.random.normal(k3, (c,), jnp.float32)
    var = 1.0 + 0.1 * jax.random.uniform(k4, (c,), jnp.float32)
    return gamma, beta, mean, var


def make_grouped_conv_bn(key, groups, cin, cout, k):
    ws, bs = [], []
    for gkey in jax.random.split(key, groups):
        kw_key, bn_key = jax.random.split(gkey)
        w = jax.random.normal(kw_key, (cout, cin, k, k),
                              jnp.float32) / math.sqrt(cin * k * k)
        scale, bias = fold_bn(*make_bn(bn_key, cout))
        w = w * scale[:, None, None, None]
        ws.append(jnp.transpose(w, (2, 3, 1, 0)).reshape(k * k * cin, cout))
        bs.append(bias)
    pad = {7: 3, 3: 1, 1: 0}[k]
    return {'w': jnp.stack(ws).astype(jnp.bfloat16),       # (G, K, N) bf16
            'b': jnp.stack(bs).reshape(groups, 1, cout),   # (G, 1, N) f32
            'k': k, 'pad': pad}


def make_grouped_extractor_params(key, groups=3):
    # TODO(synk): pretrained ResNet18 weights replaced by deterministic random init.
    it = iter(jax.random.split(key, 40))
    p = {'conv1': make_grouped_conv_bn(next(it), groups, 3, 64, 7),
         'layers': []}
    chans = [64, 64, 128, 256, 512]
    for li in range(4):
        cin, cout = chans[li], chans[li + 1]
        blocks = []
        for bi in range(2):
            stride = 2 if (li > 0 and bi == 0) else 1
            bc_in = cin if bi == 0 else cout
            blk = {'stride': stride,
                   'conv1': make_grouped_conv_bn(next(it), groups, bc_in, cout, 3),
                   'conv2': make_grouped_conv_bn(next(it), groups, cout, cout, 3)}
            if stride != 1 or bc_in != cout:
                blk['down'] = make_grouped_conv_bn(next(it), groups, bc_in, cout, 1)
            blocks.append(blk)
        p['layers'].append(blocks)
    return p


def make_linear_bn(key, fin, fout, with_bn):
    kw, kb, kbn = jax.random.split(key, 3)
    w = jax.random.normal(kw, (fout, fin), jnp.float32) / math.sqrt(fin)
    b = 0.1 * jax.random.normal(kb, (fout,), jnp.float32)
    if with_bn:
        scale, shift = fold_bn(*make_bn(kbn, fout))
        w = w * scale[:, None]
        b = b * scale + shift
    return {'w': jnp.transpose(w).astype(jnp.bfloat16), 'b': b}


def make_classifier_params(key, feature_size, class_num):
    k1, k2, k3 = jax.random.split(key, 3)
    return {'fc1': make_linear_bn(k1, feature_size, feature_size // 8, True),
            'fc2': make_linear_bn(k2, feature_size // 8, feature_size // 16, True),
            'fc3': make_linear_bn(k3, feature_size // 16, class_num, False)}


# ------------------------------ model forward ------------------------------

def basic_block_grouped(x, blk):
    stride = blk['stride']
    out1 = conv_bn_grouped(x, blk['conv1'], stride=stride, relu=True)
    if 'down' in blk:
        identity = conv_bn_grouped(x, blk['down'], stride=stride, relu=False)
    else:
        identity = x
    # conv2 + BN + residual add + ReLU fused into one kernel epilogue.
    return conv_bn_grouped(out1, blk['conv2'], stride=1, relu=True,
                           residual=identity)


def extractor_forward_grouped(x, p):
    # x: (G, B, H, W, 3) NHWC per group.
    x = conv_bn_grouped(x, p['conv1'], stride=2, relu=True)
    x = maxpool_3x3_s2_grouped(x)
    for layer in p['layers']:
        for blk in layer:
            x = basic_block_grouped(x, blk)
    G, B, Hf, Wf, C = x.shape
    return avgpool_grouped(x.reshape(G, B, Hf * Wf, C))   # (G, B, 512)


def reid_forward(img, seg, global_feat, params):
    """denorm=False path of ReID_Model.forward.
    # TODO(synk): denorm=True branch uses normalize()/denormalize() helpers
    # that are undefined in the reference module.
    """
    B, Cimg, H, W = img.shape
    P = B * H * W
    seg_t = jnp.transpose(seg, (1, 0, 2, 3)).reshape(seg.shape[1], P)
    img_t = jnp.transpose(img, (1, 0, 2, 3)).reshape(Cimg, P)
    masked = softmax_mask(seg_t, img_t)                    # (3, Cimg, P)
    x = masked.reshape(3, Cimg, B, H, W)
    x = jnp.transpose(x, (0, 2, 3, 4, 1))                  # (3, B, H, W, Cimg)

    feats = extractor_forward_grouped(x, params['extractors'])  # (3, B, 512)
    f = jnp.concatenate([global_feat, feats[0], feats[1], feats[2]], axis=1)
    logits = classifier_forward(f, params['cls'])
    return f, logits


# ---------------------------------- main -----------------------------------

if __name__ == "__main__":
    key = jax.random.PRNGKey(0)
    kp, ki = jax.random.split(key)
    k_img, k_seg, k_gf = jax.random.split(ki, 3)

    B, H, W = 2, 32, 32
    class_num, feature_size, seg_n = 71, 512, 4

    img = jax.random.normal(k_img, (B, 3, H, W), jnp.float32)
    seg = jax.random.normal(k_seg, (B, seg_n, H, W), jnp.float32)
    global_feat = jax.random.normal(k_gf, (B, feature_size), jnp.float32)

    k_ext, k_cls = jax.random.split(kp)
    params = {
        'extractors': make_grouped_extractor_params(k_ext, groups=3),
        'cls': make_classifier_params(k_cls, feature_size * seg_n, class_num),
    }

    f, x = reid_forward(img, seg, global_feat, params)
    f, x = jax.block_until_ready((f, x))

    assert f.shape == (B, feature_size * seg_n), f.shape
    assert x.shape == (B, class_num), x.shape
    assert bool(jnp.all(jnp.isfinite(f))) and bool(jnp.all(jnp.isfinite(x)))
    print("KERNEL_OK")
</pallas_src>

<mosaic_0001>
module attributes {stable_mosaic.version = 11 : i64} {
  func.func @_softmax_mask_kernel(%arg0: i32, %arg1: memref<4x2048xf32, #tpu.memory_space<vmem>>, %arg2: memref<3x2048xf32, #tpu.memory_space<vmem>>, %arg3: memref<3x3x2048xf32, #tpu.memory_space<vmem>>) attributes {dimension_semantics = [#tpu.dimension_semantics<arbitrary>], iteration_bounds = array<i64: 1>, scalar_prefetch = 0 : i64, scratch_operands = 0 : i64, tpu.core_type = #tpu.core_type<tc>, window_params = [{pipeline_mode = #tpu.pipeline_mode<synchronous>, transform_indices = @transform_0, window_bounds = array<i64: 4, 2048>}, {pipeline_mode = #tpu.pipeline_mode<synchronous>, transform_indices = @transform_1, window_bounds = array<i64: 3, 2048>}, {pipeline_mode = #tpu.pipeline_mode<synchronous>, transform_indices = @transform_2, window_bounds = array<i64: 3, 3, 2048>}]} {
    %c0 = arith.constant 0 : index
    %c0_0 = arith.constant 0 : index
    %0 = vector.load %arg1[%c0, %c0_0] : memref<4x2048xf32, #tpu.memory_space<vmem>>, vector<4x2048xf32>
    %1 = vector.extract_strided_slice %0 {offsets = [0, 0], sizes = [1, 2048], strides = [1, 1]} : vector<4x2048xf32> to vector<1x2048xf32>
    %2 = vector.extract_strided_slice %0 {offsets = [1, 0], sizes = [1, 2048], strides = [1, 1]} : vector<4x2048xf32> to vector<1x2048xf32>
    %3 = arith.maximumf %1, %2 : vector<1x2048xf32>
    %4 = vector.extract_strided_slice %0 {offsets = [2, 0], sizes = [1, 2048], strides = [1, 1]} : vector<4x2048xf32> to vector<1x2048xf32>
    %5 = vector.extract_strided_slice %0 {offsets = [3, 0], sizes = [1, 2048], strides = [1, 1]} : vector<4x2048xf32> to vector<1x2048xf32>
    %6 = arith.maximumf %4, %5 : vector<1x2048xf32>
    %7 = arith.maximumf %3, %6 : vector<1x2048xf32>
    %8 = vector.broadcast %7 : vector<1x2048xf32> to vector<4x2048xf32>
    %9 = arith.subf %0, %8 : vector<4x2048xf32>
    %10 = math.exp %9 : vector<4x2048xf32>
    %11 = vector.extract_strided_slice %10 {offsets = [0, 0], sizes = [1, 2048], strides = [1, 1]} : vector<4x2048xf32> to vector<1x2048xf32>
    %12 = vector.extract_strided_slice %10 {offsets = [1, 0], sizes = [1, 2048], strides = [1, 1]} : vector<4x2048xf32> to vector<1x2048xf32>
    %13 = arith.addf %11, %12 : vector<1x2048xf32>
    %14 = vector.extract_strided_slice %10 {offsets = [2, 0], sizes = [1, 2048], strides = [1, 1]} : vector<4x2048xf32> to vector<1x2048xf32>
    %15 = arith.addf %13, %14 : vector<1x2048xf32>
    %16 = vector.extract_strided_slice %10 {offsets = [3, 0], sizes = [1, 2048], strides = [1, 1]} : vector<4x2048xf32> to vector<1x2048xf32>
    %17 = arith.addf %15, %16 : vector<1x2048xf32>
    %cst = arith.constant 1.000000e+00 : f32
    %18 = vector.broadcast %cst : f32 to vector<1x2048xf32>
    %19 = arith.divf %18, %17 : vector<1x2048xf32>
    %c0_1 = arith.constant 0 : index
    %c0_2 = arith.constant 0 : index
    %20 = vector.load %arg2[%c0_1, %c0_2] : memref<3x2048xf32, #tpu.memory_space<vmem>>, vector<3x2048xf32>
    %21 = vector.extract_strided_slice %10 {offsets = [1, 0], sizes = [1, 2048], strides = [1, 1]} : vector<4x2048xf32> to vector<1x2048xf32>
    %22 = arith.mulf %21, %19 : vector<1x2048xf32>
    %23 = vector.broadcast %22 : vector<1x2048xf32> to vector<3x2048xf32>
    %24 = arith.mulf %20, %23 : vector<3x2048xf32>
    %c0_3 = arith.constant 0 : index
    %c0_4 = arith.constant 0 : index
    %c0_5 = arith.constant 0 : index
    %25 = vector.load %arg3[%c0_3, %c0_4, %c0_5] : memref<3x3x2048xf32, #tpu.memory_space<vmem>>, vector<1x3x2048xf32>
    %26 = vector.shape_cast %25 : vector<1x3x2048xf32> to vector<3x2048xf32>
    %27 = vector.shape_cast %24 : vector<3x2048xf32> to vector<1x3x2048xf32>
    tpu.vector_store %arg3[%c0_3, %c0_4, %c0_5], %27 {strides = array<i32>} : memref<3x3x2048xf32, #tpu.memory_space<vmem>>, vector<1x3x2048xf32>,
    %28 = vector.extract_strided_slice %10 {offsets = [2, 0], sizes = [1, 2048], strides = [1, 1]} : vector<4x2048xf32> to vector<1x2048xf32>
    %29 = arith.mulf %28, %19 : vector<1x2048xf32>
    %30 = vector.broadcast %29 : vector<1x2048xf32> to vector<3x2048xf32>
    %31 = arith.mulf %20, %30 : vector<3x2048xf32>
    %c1 = arith.constant 1 : index
    %c0_6 = arith.constant 0 : index
    %c0_7 = arith.constant 0 : index
    %32 = vector.load %arg3[%c1, %c0_6, %c0_7] : memref<3x3x2048xf32, #tpu.memory_space<vmem>>, vector<1x3x2048xf32>
    %33 = vector.shape_cast %32 : vector<1x3x2048xf32> to vector<3x2048xf32>
    %34 = vector.shape_cast %31 : vector<3x2048xf32> to vector<1x3x2048xf32>
    tpu.vector_store %arg3[%c1, %c0_6, %c0_7], %34 {strides = array<i32>} : memref<3x3x2048xf32, #tpu.memory_space<vmem>>, vector<1x3x2048xf32>,
    %35 = vector.extract_strided_slice %10 {offsets = [3, 0], sizes = [1, 2048], strides = [1, 1]} : vector<4x2048xf32> to vector<1x2048xf32>
    %36 = arith.mulf %35, %19 : vector<1x2048xf32>
    %37 = vector.broadcast %36 : vector<1x2048xf32> to vector<3x2048xf32>
    %38 = arith.mulf %20, %37 : vector<3x2048xf32>
    %c2 = arith.constant 2 : index
    %c0_8 = arith.constant 0 : index
    %c0_9 = arith.constant 0 : index
    %39 = vector.load %arg3[%c2, %c0_8, %c0_9] : memref<3x3x2048xf32, #tpu.memory_space<vmem>>, vector<1x3x2048xf32>
    %40 = vector.shape_cast %39 : vector<1x3x2048xf32> to vector<3x2048xf32>
    %41 = vector.shape_cast %38 : vector<3x2048xf32> to vector<1x3x2048xf32>
    tpu.vector_store %arg3[%c2, %c0_8, %c0_9], %41 {strides = array<i32>} : memref<3x3x2048xf32, #tpu.memory_space<vmem>>, vector<1x3x2048xf32>,
    return
  }
  func.func @transform_0(%arg0: i32) -> (i32, i32) {
    %c0_i32 = arith.constant 0 : i32
    %c0_i32_0 = arith.constant 0 : i32
    %c0_i32_1 = arith.constant 0 : i32
    return %c0_i32, %c0_i32_0 : i32, i32
  }
  func.func @transform_1(%arg0: i32) -> (i32, i32) {
    %c0_i32 = arith.constant 0 : i32
    %c0_i32_0 = arith.constant 0 : i32
    %c0_i32_1 = arith.constant 0 : i32
    return %c0_i32, %c0_i32_0 : i32, i32
  }
  func.func @transform_2(%arg0: i32) -> (i32, i32, i32) {
    %c0_i32 = arith.constant 0 : i32
    %c0_i32_0 = arith.constant 0 : i32
    %c0_i32_1 = arith.constant 0 : i32
    %c0_i32_2 = arith.constant 0 : i32
    return %c0_i32, %c0_i32_0, %c0_i32_1 : i32, i32, i32
  }
}

</mosaic_0001>

<bundles_post_ra>
// kernel: tpu_custom_call.1
= control target key start
LH: loop header
LB: loop body
LE: loop exit
PB: predicated region body
PF: predicated region fallthrough
CT: control target
= control target key end

     0   :  { %7 = vsyncpa [#allocation3], 0  ;;  %s1684_s0 = inlined_call_operand.hbm [shape: f32[4,2048], index: 0, kind: input, shape index: {}]   ;;  %s1685_s1 = inlined_call_operand.hbm [shape: f32[3,2048], index: 1, kind: input, shape index: {}]   ;;  %s1686_s2 = inlined_call_operand.hbm [shape: f32[3,3,2048], index: 2, kind: output, shape index: {}]  }
   0x1   :  { %8 = vsyncpa [#allocation6], 0 }
   0x2   :  { %9 = vsyncpa [#allocation4], 0  ;;  %s1303_s9 = smov [#allocation2]   ;;  %s1304_s11 = smov [#allocation5]  }
   0x3   :  { %s16_s10 = sshll.u32 %s1303_s9, 4  ;;  %s26_s12 = sshll.u32 %s1304_s11, 4  ;;  %s17_s10 = int_to_ptr.vmem [resolvable:$true] %s16_s10  ;;  %s27_s12 = int_to_ptr.vmem [resolvable:$true] %s26_s12 }
   0x4   :  { %s1245_s13 = scalar_lea.vmem %s17_s10, 1024  ;;  %p1250_p1 = scmp.lt.s32.totalorder %s17_s10, %s17_s10 }
   0x5   :  { %p1246_p0 = scmp.ne.s32.totalorder %s17_s10, %s1245_s13  ;;  %p1251_p2 = scmp.lt.s32.totalorder %s1245_s13, %s1245_s13 }
   0x7   :  { %p1252_p3 = por %p1251_p2, %p1250_p1 }
   0x9   :  { %p1253_p4 = pnand %p1252_p3, %p1246_p0 }
   0xb   :  { %1256 = shalt.err (!%p1253_p4)
}
   0xc   :  { %19 = dma.hbm_to_vmem [thread:$0]  %s1684_s0, 1024, %s17_s10, [#allocation3]  }
   0xd   :  { %s1265_s16 = scalar_lea.vmem %s27_s12, 1024  ;;  %p1270_p6 = scmp.lt.s32.totalorder %s27_s12, %s27_s12 }
   0xe   :  { %p1266_p5 = scmp.ne.s32.totalorder %s27_s12, %s1265_s16  ;;  %p1271_p7 = scmp.lt.s32.totalorder %s1265_s16, %s1265_s16 }
  0x10   :  { %p1272_p8 = por %p1271_p7, %p1270_p6 }
  0x12   :  { %p1273_p9 = pnand %p1272_p8, %p1266_p5 }
  0x14   :  { %1276 = shalt.err (!%p1273_p9)
}
  0x15   :  { %29 = dma.hbm_to_vmem [thread:$0]  %s1685_s1, 1024, %s27_s12, [#allocation6]  }
  0x16   :  { %1297 = dma.done.wait [#allocation3], 1024  }
  0x17   :  { %1298 = vsyncadd [#allocation3], 4294966272 }
  0x18   :  { %1299 = dma.done.wait [#allocation6], 1024  }
  0x19   :  { %1300 = vsyncadd [#allocation6], 4294966272  ;;  %v132_v0 = vlaneseq  ;;  %v1331_v2 = vld [vmem:[#allocation2] sm:$0xff]  ;;  %v1333_v3 = vld [vmem:[#allocation2 + $0x8] sm:$0xff]  ;;  %s1305_s0 = smov [#allocation7]  }
  0x1a   :  { %v1335_v4 = vld [vmem:[#allocation2 + $0x10] sm:$0xff]  ;;  %v1340_v6 = vld [vmem:[#allocation2 + $0x18] sm:$0xff]  ;;  %v1342_v7 = vld [vmem:[#allocation2 + $0x20] sm:$0xff]  ;;  %v1160_v9 = vrot.slane %v1331_v2, 9  ;;  %v1161_v10 = vrot.slane %v1333_v3, 9  ;;  %s1147_s1 = sshll.u32 %s1305_s0, 4  ;;  %s1148_s1 = int_to_ptr.vmem [resolvable:$true] %s1147_s1 }
  0x1b   :  { %v1329_v1 = vshrl.u32 %v132_v0, 7  ;;  %v1344_v8 = vld [vmem:[#allocation2 + $0x28] sm:$0xff]  ;;  %v1162_v11 = vrot.slane %v1335_v4, 9  ;;  %v1349_v12 = vld [vmem:[#allocation2 + $0x30] sm:$0xff]  ;;  %v1351_v13 = vld [vmem:[#allocation2 + $0x38] sm:$0xff]  ;;  %v1163_v14 = vrot.slane %v1340_v6, 9  ;;  %p1282_p11 = scmp.lt.s32.totalorder %s1148_s1, %s1148_s1 }
  0x1c   :  { %v1164_v15 = vrot.slane %v1342_v7, 9  ;;  %v1165_v16 = vrot.slane %v1344_v8, 9  ;;  %v1166_v18 = vrot.slane %v1349_v12, 9  ;;  %v1167_v19 = vrot.slane %v1351_v13, 9  ;;  %s1277_s19 = scalar_lea.vmem %s1148_s1, 3072 }
  0x1d   :  { %v1338_v5 = vsub.s32 0, %v1329_v1  ;;  %v138_v17 = vsub.s32 4, %v1329_v1  ;;  %v76_v20 = vmax.f32 %v1331_v2, %v1160_v9  ;;  %v77_v21 = vmax.f32 %v1333_v3, %v1161_v10  ;;  %p1278_p10 = scmp.ne.s32.totalorder %s1148_s1, %s1277_s19  ;;  %p1283_p12 = scmp.lt.s32.totalorder %s1277_s19, %s1277_s19 }
  0x1e   :  { %v78_v22 = vmax.f32 %v1335_v4, %v1162_v11  ;;  %v79_v23 = vmax.f32 %v1340_v6, %v1163_v14  ;;  %v80_v24 = vmax.f32 %v1342_v7, %v1164_v15  ;;  %v81_v25 = vmax.f32 %v1344_v8, %v1165_v16 }
  0x1f   :  { %v82_v26 = vmax.f32 %v1349_v12, %v1166_v18  ;;  %v83_v27 = vmax.f32 %v1351_v13, %v1167_v19  ;;  %v1168_v28 = vrot.slane %v76_v20, 10  ;;  %v1169_v29 = vrot.slane %v77_v21, 10  ;;  %p1284_p13 = por %p1283_p12, %p1282_p11 }
  0x20   :  { %v1170_v30 = vrot.slane %v78_v22, 10  ;;  %v1171_v31 = vrot.slane %v79_v23, 10  ;;  %v1172_v32 = vrot.slane %v80_v24, 10  ;;  %v1173_v33 = vrot.slane %v81_v25, 10 }
  0x21   :  { %v1174_v34 = vrot.slane %v82_v26, 10  ;;  %v1175_v35 = vrot.slane %v83_v27, 10  ;;  %v116_v36 = vmax.f32 %v76_v20, %v1168_v28  ;;  %v117_v37 = vmax.f32 %v77_v21, %v1169_v29  ;;  %p1285_p0 = pnand %p1284_p13, %p1278_p10 }
  0x22   :  { %v118_v38 = vmax.f32 %v78_v22, %v1170_v30  ;;  %v119_v39 = vmax.f32 %v79_v23, %v1171_v31  ;;  %v120_v40 = vmax.f32 %v80_v24, %v1172_v32  ;;  %v121_v41 = vmax.f32 %v81_v25, %v1173_v33 }
  0x23   :  { %v122_v42 = vmax.f32 %v82_v26, %v1174_v34  ;;  %v123_v43 = vmax.f32 %v83_v27, %v1175_v35  ;;  %v135_v44 = vrot.slane %v116_v36, %v1338_v5  ;;  %v139_v45 = vrot.slane %v116_v36, %v138_v17 }
  0x24   :  { %v143_v46 = vrot.slane %v117_v37, %v1338_v5  ;;  %v147_v47 = vrot.slane %v117_v37, %v138_v17  ;;  %v151_v48 = vrot.slane %v118_v38, %v1338_v5  ;;  %v155_v49 = vrot.slane %v118_v38, %v138_v17 }
  0x25   :  { %v159_v50 = vrot.slane %v119_v39, %v1338_v5  ;;  %v163_v51 = vrot.slane %v119_v39, %v138_v17  ;;  %v167_v52 = vrot.slane %v120_v40, %v1338_v5  ;;  %v171_v53 = vrot.slane %v120_v40, %v138_v17 }
  0x26   :  { %v175_v54 = vrot.slane %v121_v41, %v1338_v5  ;;  %v179_v55 = vrot.slane %v121_v41, %v138_v17  ;;  %v183_v56 = vrot.slane %v122_v42, %v1338_v5  ;;  %v187_v57 = vrot.slane %v122_v42, %v138_v17 }
  0x27   :  { %v191_v58 = vrot.slane %v123_v43, %v1338_v5  ;;  %v195_v59 = vrot.slane %v123_v43, %v138_v17  ;;  %v215_v60 = vrot.slane %v135_v44, %v1338_v5  ;;  %v219_v61 = vrot.slane %v139_v45, %v1338_v5 }
  0x28   :  { %v223_v62 = vrot.slane %v143_v46, %v1338_v5  ;;  %v227_v63 = vrot.slane %v147_v47, %v1338_v5  ;;  %v231_v0 = vrot.slane %v151_v48, %v1338_v5  ;;  %v235_v9 = vrot.slane %v155_v49, %v1338_v5 }
  0x29   :  { %v239_v10 = vrot.slane %v159_v50, %v1338_v5  ;;  %v243_v11 = vrot.slane %v163_v51, %v1338_v5  ;;  %v247_v14 = vrot.slane %v167_v52, %v1338_v5  ;;  %v251_v15 = vrot.slane %v171_v53, %v1338_v5 }
  0x2a   :  { %v255_v16 = vrot.slane %v175_v54, %v1338_v5  ;;  %v259_v17 = vrot.slane %v179_v55, %v1338_v5  ;;  %v263_v18 = vrot.slane %v183_v56, %v1338_v5  ;;  %v267_v19 = vrot.slane %v187_v57, %v1338_v5 }
  0x2b   :  { %v271_v20 = vrot.slane %v191_v58, %v1338_v5  ;;  %v275_v21 = vrot.slane %v195_v59, %v1338_v5  ;;  %v292_v22 = vcombine.low %v215_v60, %v219_v61  ;;  %v293_v23 = vcombine.low %v223_v62, %v227_v63 }
  0x2c   :  { %v294_v24 = vcombine.low %v231_v0, %v235_v9  ;;  %v295_v25 = vcombine.low %v239_v10, %v243_v11  ;;  %v296_v26 = vcombine.low %v247_v14, %v251_v15  ;;  %v297_v27 = vcombine.low %v255_v16, %v259_v17 }
  0x2d   :  { %v298_v28 = vcombine.low %v263_v18, %v267_v19  ;;  %v299_v29 = vcombine.low %v271_v20, %v275_v21  ;;  %v308_v30 = vsub.f32 %v1331_v2, %v292_v22  ;;  %v309_v31 = vsub.f32 %v1333_v3, %v293_v23 }
  0x2e   :  { %v310_v32 = vsub.f32 %v1335_v4, %v294_v24  ;;  %v311_v33 = vsub.f32 %v1340_v6, %v295_v25  ;;  %v312_v34 = vsub.f32 %v1342_v7, %v296_v26  ;;  %v313_v5 = vsub.f32 %v1344_v8, %v297_v27 }
  0x2f   :  { %v314_v35 = vsub.f32 %v1349_v12, %v298_v28  ;;  %v316_v36 = vmul.f32 1.442695, %v308_v30  ;;  %v318_v37 = vmul.f32 1.442695, %v309_v31  ;;  %v315_v2 = vsub.f32 %v1351_v13, %v299_v29 }
  0x30   :  { %v320_v38 = vmul.f32 1.442695, %v310_v32  ;;  %v322_v39 = vmul.f32 1.442695, %v311_v33  ;;  %v324_v40 = vmul.f32 1.442695, %v312_v34 }
  0x31   :  { %1205 = vpow2.f32 %v316_v36  ;;  %v326_v3 = vmul.f32 1.442695, %v313_v5  ;;  %v328_v4 = vmul.f32 1.442695, %v314_v35  ;;  %v330_v6 = vmul.f32 1.442695, %v315_v2 }
  0x32   :  { %1207 = vpow2.f32 %v318_v37  ;;  %v1456_v2 = vsub.s32 2, %v1329_v1 }
  0x33   :  { %1209 = vpow2.f32 %v320_v38 }
  0x34   :  { %1211 = vpow2.f32 %v322_v39  ;;  %v1450_v39 = vsub.s32 1, %v1329_v1 }
  0x35   :  { %1213 = vpow2.f32 %v324_v40  ;;  %v1453_v40 = vsub.s32 5, %v1329_v1 }
  0x36   :  { %1215 = vpow2.f32 %v326_v3  ;;  %v1459_v3 = vsub.s32 3, %v1329_v1 }
  0x37   :  { %1217 = vpow2.f32 %v328_v4 }
  0x38   :  { %1219 = vpow2.f32 %v330_v6 }
  0x3e   :  { %v1399_v7 = vpop.eup %1205 }
  0x3f   :  { %v1401_v8 = vpop.eup %1207  ;;  %v1176_v12 = vrot.slane %v1399_v7, 9  ;;  %v1184_v41 = vrot.slane %v1399_v7, 10  ;;  %v1192_v13 = vrot.slane %v1399_v7, 11 }
  0x40   :  { %v1405_v42 = vpop.eup %1209  ;;  %v1177_v43 = vrot.slane %v1401_v8, 9  ;;  %v1185_v44 = vrot.slane %v1401_v8, 10  ;;  %v1193_v45 = vrot.slane %v1401_v8, 11 }
  0x41   :  { %v1411_v46 = vpop.eup %1211  ;;  %v364_v47 = vadd.f32 %v1399_v7, %v1176_v12  ;;  %v1178_v48 = vrot.slane %v1405_v42, 9  ;;  %v1186_v49 = vrot.slane %v1405_v42, 10  ;;  %v1194_v50 = vrot.slane %v1405_v42, 11 }
  0x42   :  { %v1417_v51 = vpop.eup %1213  ;;  %v365_v52 = vadd.f32 %v1401_v8, %v1177_v43  ;;  %v1179_v53 = vrot.slane %v1411_v46, 9  ;;  %v1187_v54 = vrot.slane %v1411_v46, 10  ;;  %v1195_v55 = vrot.slane %v1411_v46, 11 }
  0x43   :  { %v1423_v56 = vpop.eup %1215  ;;  %v396_v57 = vadd.f32 %v1184_v41, %v364_v47  ;;  %v366_v58 = vadd.f32 %v1405_v42, %v1178_v48  ;;  %v1180_v59 = vrot.slane %v1417_v51, 9  ;;  %v1188_v60 = vrot.slane %v1417_v51, 10 }
  0x44   :  { %v1428_v61 = vpop.eup %1217  ;;  %v397_v62 = vadd.f32 %v1185_v44, %v365_v52  ;;  %v367_v63 = vadd.f32 %v1411_v46, %v1179_v53  ;;  %v1196_v0 = vrot.slane %v1417_v51, 11  ;;  %v1181_v9 = vrot.slane %v1423_v56, 9 }
  0x45   :  { %v428_v10 = vadd.f32 %v1192_v13, %v396_v57  ;;  %v398_v11 = vadd.f32 %v1186_v49, %v366_v58  ;;  %v368_v14 = vadd.f32 %v1417_v51, %v1180_v59  ;;  %v1189_v15 = vrot.slane %v1423_v56, 10  ;;  %v1437_v20 = vpop.eup %1219 }
  0x46   :  { %v429_v16 = vadd.f32 %v1193_v45, %v397_v62  ;;  %v399_v17 = vadd.f32 %v1187_v54, %v367_v63  ;;  %v369_v18 = vadd.f32 %v1423_v56, %v1181_v9  ;;  %v1197_v19 = vrot.slane %v1423_v56, 11 }
  0x47   :  { %1221 = vrcp.f32 %v428_v10  ;;  %v430_v21 = vadd.f32 %v1194_v50, %v398_v11  ;;  %v400_v22 = vadd.f32 %v1188_v60, %v368_v14  ;;  %v1182_v23 = vrot.slane %v1428_v61, 9 }
  0x48   :  { %1223 = vrcp.f32 %v429_v16  ;;  %v431_v24 = vadd.f32 %v1195_v55, %v399_v17  ;;  %v401_v25 = vadd.f32 %v1189_v15, %v369_v18  ;;  %v1190_v26 = vrot.slane %v1428_v61, 10 }
  0x49   :  { %1225 = vrcp.f32 %v430_v21  ;;  %v432_v27 = vadd.f32 %v1196_v0, %v400_v22  ;;  %v370_v28 = vadd.f32 %v1428_v61, %v1182_v23  ;;  %v1198_v29 = vrot.slane %v1428_v61, 11  ;;  %v1507_v21 = vld [vmem:[#allocation5] sm:$0x77] }
  0x4a   :  { %1227 = vrcp.f32 %v431_v24  ;;  %v433_v30 = vadd.f32 %v1197_v19, %v401_v25  ;;  %v1183_v31 = vrot.slane %v1437_v20, 9  ;;  %v1191_v32 = vrot.slane %v1437_v20, 10 }
  0x4b   :  { %1229 = vrcp.f32 %v432_v27  ;;  %v402_v33 = vadd.f32 %v1190_v26, %v370_v28  ;;  %v1199_v5 = vrot.slane %v1437_v20, 11  ;;  %v1466_v41 = vsub.s32 6, %v1329_v1  ;;  %v1513_v27 = vld [vmem:[#allocation5 + $0x8] sm:$0x77] }
  0x4c   :  { %1231 = vrcp.f32 %v433_v30  ;;  %v371_v34 = vadd.f32 %v1437_v20, %v1183_v31  ;;  %v1469_v13 = vsub.s32 7, %v1329_v1 }
  0x4d   :  { %v434_v35 = vadd.f32 %v1198_v29, %v402_v33  ;;  %v1520_v33 = vld [vmem:[#allocation5 + $0x10] sm:$0x77] }
  0x4e   :  { %v403_v36 = vadd.f32 %v1191_v32, %v371_v34 }
  0x4f   :  { %1233 = vrcp.f32 %v434_v35 }
  0x50   :  { %v435_v37 = vadd.f32 %v1199_v5, %v403_v36 }
  0x52   :  { %1235 = vrcp.f32 %v435_v37 }
  0x54   :  { %v1447_v38 = vpop.eup %1221 }
  0x55   :  { %v1461_v4 = vpop.eup %1223  ;;  %v468_v6 = vrot.slane %v1447_v38, 7  ;;  %v692_v12 = vrot.slane %v1447_v38, 6  ;;  %v917_v47 = vrot.slane %v1447_v38, 5 }
  0x56   :  { %v1471_v43 = vpop.eup %1225  ;;  %v469_v44 = vrot.slane %v1461_v4, 7  ;;  %v693_v45 = vrot.slane %v1461_v4, 6  ;;  %v918_v48 = vrot.slane %v1461_v4, 5 }
  0x57   :  { %v1477_v49 = vpop.eup %1227  ;;  %v484_v50 = vmul.f32 %v1399_v7, %v468_v6  ;;  %v470_v52 = vrot.slane %v1471_v43, 7  ;;  %v1482_v53 = vmul.f32 %v1399_v7, %v692_v12  ;;  %v694_v1 = vrot.slane %v1471_v43, 6  ;;  %v1528_v12 = vld [vmem:[#allocation5 + $0x18] sm:$0x77] }
  0x58   :  { %v1485_v54 = vpop.eup %1229  ;;  %v485_v55 = vmul.f32 %v1401_v8, %v469_v44  ;;  %v471_v57 = vrot.slane %v1477_v49, 7  ;;  %v1490_v58 = vmul.f32 %v1401_v8, %v693_v45  ;;  %v695_v59 = vrot.slane %v1477_v49, 6 }
  0x59   :  { %v1493_v60 = vpop.eup %1231  ;;  %v503_v62 = vrot.slane %v484_v50, %v1450_v39  ;;  %v507_v63 = vrot.slane %v484_v50, %v1453_v40  ;;  %v486_v0 = vmul.f32 %v1405_v42, %v470_v52  ;;  %v472_v9 = vrot.slane %v1485_v54, 7 }
  0x5a   :  { %v511_v10 = vrot.slane %v485_v55, %v1450_v39  ;;  %v515_v11 = vrot.slane %v485_v55, %v1453_v40  ;;  %v487_v14 = vmul.f32 %v1411_v46, %v471_v57  ;;  %v473_v15 = vrot.slane %v1493_v60, 7 }
  0x5b   :  { %v583_v16 = vrot.slane %v503_v62, %v1450_v39  ;;  %v587_v17 = vrot.slane %v507_v63, %v1450_v39  ;;  %v519_v18 = vrot.slane %v486_v0, %v1450_v39  ;;  %v523_v19 = vrot.slane %v486_v0, %v1453_v40 }
  0x5c   :  { %v591_v22 = vrot.slane %v511_v10, %v1450_v39  ;;  %v595_v23 = vrot.slane %v515_v11, %v1450_v39  ;;  %v527_v24 = vrot.slane %v487_v14, %v1450_v39  ;;  %v531_v25 = vrot.slane %v487_v14, %v1453_v40  ;;  %v1518_v31 = vpop.eup %1233  ;;  %v1540_v11 = vld [vmem:[#allocation5 + $0x20] sm:$0x77] }
  0x5d   :  { %v660_v26 = vcombine.low %v583_v16, %v587_v17  ;;  %v599_v28 = vrot.slane %v519_v18, %v1450_v39  ;;  %v603_v29 = vrot.slane %v523_v19, %v1450_v39  ;;  %v488_v30 = vmul.f32 %v1417_v51, %v472_v9  ;;  %v1545_v18 = vld [vmem:[#allocation5 + $0x28] sm:$0x77] }
  0x5e   :  { %v661_v32 = vcombine.low %v591_v22, %v595_v23  ;;  %v607_v34 = vrot.slane %v527_v24, %v1450_v39  ;;  %v611_v5 = vrot.slane %v531_v25, %v1450_v39  ;;  %v489_v35 = vmul.f32 %v1423_v56, %v473_v15 }
  0x5f   :  { %v1525_v36 = vpop.eup %1235  ;;  %v676_v37 = vmul.f32 %v660_v26, %v1507_v21  ;;  %v662_v6 = vcombine.low %v599_v28, %v603_v29  ;;  %v535_v44 = vrot.slane %v488_v30, %v1450_v39  ;;  %v539_v45 = vrot.slane %v488_v30, %v1453_v40 }
  0x60   :  { %v677_v50 = vmul.f32 %v661_v32, %v1513_v27  ;;  %v663_v52 = vcombine.low %v607_v34, %v611_v5  ;;  %v543_v55 = vrot.slane %v489_v35, %v1450_v39  ;;  %v547_v57 = vrot.slane %v489_v35, %v1453_v40 }
  0x61   :  { %684 = vst [vmem:[#allocation7] sm:$0x77] %v676_v37  ;;  %v678_v62 = vmul.f32 %v662_v6, %v1520_v33  ;;  %v615_v63 = vrot.slane %v535_v44, %v1450_v39  ;;  %v619_v0 = vrot.slane %v539_v45, %v1450_v39  ;;  %v474_v9 = vrot.slane %v1518_v31, 7 }
  0x62   :  { %685 = vst [vmem:[#allocation7 + $0x8] sm:$0x77] %v677_v50  ;;  %v679_v10 = vmul.f32 %v663_v52, %v1528_v12  ;;  %v623_v14 = vrot.slane %v543_v55, %v1450_v39  ;;  %v627_v15 = vrot.slane %v547_v57, %v1450_v39  ;;  %v475_v16 = vrot.slane %v1525_v36, 7  ;;  %v1569_v50 = vld [vmem:[#allocation5 + $0x30] sm:$0x77] }
  0x63   :  { %686 = vst [vmem:[#allocation7 + $0x10] sm:$0x77] %v678_v62  ;;  %v664_v17 = vcombine.low %v615_v63, %v619_v0  ;;  %v490_v19 = vmul.f32 %v1428_v61, %v474_v9  ;;  %v727_v22 = vrot.slane %v1482_v53, %v1456_v2  ;;  %v731_v23 = vrot.slane %v1482_v53, %v1466_v41  ;;  %v1576_v63 = vld [vmem:[#allocation5 + $0x38] sm:$0x77] }
  0x64   :  { %687 = vst [vmem:[#allocation7 + $0x18] sm:$0x77] %v679_v10  ;;  %v665_v24 = vcombine.low %v623_v14, %v627_v15  ;;  %v491_v25 = vmul.f32 %v1437_v20, %v475_v16  ;;  %v735_v26 = vrot.slane %v1490_v58, %v1456_v2  ;;  %v739_v28 = vrot.slane %v1490_v58, %v1466_v41 }
  0x65   :  { %v680_v29 = vmul.f32 %v664_v17, %v1540_v11  ;;  %v551_v30 = vrot.slane %v490_v19, %v1450_v39  ;;  %v555_v32 = vrot.slane %v490_v19, %v1453_v40  ;;  %v807_v34 = vrot.slane %v727_v22, %v1456_v2 }
  0x66   :  { %v681_v53 = vmul.f32 %v665_v24, %v1545_v18  ;;  %v559_v5 = vrot.slane %v491_v25, %v1450_v39  ;;  %v563_v35 = vrot.slane %v491_v25, %v1453_v40  ;;  %v811_v37 = vrot.slane %v731_v23, %v1456_v2 }
  0x67   :  { %688 = vst [vmem:[#allocation7 + $0x20] sm:$0x77] %v680_v29  ;;  %v631_v6 = vrot.slane %v551_v30, %v1450_v39  ;;  %v635_v58 = vrot.slane %v555_v32, %v1450_v39  ;;  %v815_v44 = vrot.slane %v735_v26, %v1456_v2  ;;  %v819_v45 = vrot.slane %v739_v28, %v1456_v2 }
  0x68   :  { %689 = vst [vmem:[#allocation7 + $0x28] sm:$0x77] %v681_v53  ;;  %v639_v52 = vrot.slane %v559_v5, %v1450_v39  ;;  %v643_v55 = vrot.slane %v563_v35, %v1450_v39  ;;  %v884_v57 = vcombine.low %v807_v34, %v811_v37  ;;  %v710_v40 = vmul.f32 %v1405_v42, %v694_v1 }
  0x69   :  { %v666_v62 = vcombine.low %v631_v6, %v635_v58  ;;  %v885_v0 = vcombine.low %v815_v44, %v819_v45  ;;  %v711_v9 = vmul.f32 %v1411_v46, %v695_v59  ;;  %v696_v10 = vrot.slane %v1485_v54, 6 }
  0x6a   :  { %v667_v14 = vcombine.low %v639_v52, %v643_v55  ;;  %v900_v15 = vmul.f32 %v884_v57, %v1507_v21  ;;  %v743_v39 = vrot.slane %v710_v40, %v1456_v2  ;;  %v747_v16 = vrot.slane %v710_v40, %v1466_v41 }
  0x6b   :  { %v682_v17 = vmul.f32 %v666_v62, %v1569_v50  ;;  %v901_v1 = vmul.f32 %v885_v0, %v1513_v27  ;;  %v751_v19 = vrot.slane %v711_v9, %v1456_v2  ;;  %v755_v22 = vrot.slane %v711_v9, %v1466_v41 }
  0x6c   :  { %v683_v23 = vmul.f32 %v667_v14, %v1576_v63  ;;  %909 = vst [vmem:[#allocation7 + $0x40] sm:$0x77] %v900_v15  ;;  %v823_v59 = vrot.slane %v743_v39, %v1456_v2  ;;  %v827_v24 = vrot.slane %v747_v16, %v1456_v2  ;;  %v712_v25 = vmul.f32 %v1417_v51, %v696_v10 }
  0x6d   :  { %690 = vst [vmem:[#allocation7 + $0x30] sm:$0x77] %v682_v17  ;;  %910 = vst [vmem:[#allocation7 + $0x48] sm:$0x77] %v901_v1  ;;  %v831_v26 = vrot.slane %v751_v19, %v1456_v2  ;;  %v835_v28 = vrot.slane %v755_v22, %v1456_v2  ;;  %v697_v29 = vrot.slane %v1493_v60, 6  ;;  %v698_v30 = vrot.slane %v1518_v31, 6 }
  0x6e   :  { %691 = vst [vmem:[#allocation7 + $0x38] sm:$0x77] %v683_v23  ;;  %v886_v32 = vcombine.low %v823_v59, %v827_v24  ;;  %v759_v34 = vrot.slane %v712_v25, %v1456_v2  ;;  %v763_v53 = vrot.slane %v712_v25, %v1466_v41  ;;  %v699_v5 = vrot.slane %v1525_v36, 6 }
  0x6f   :  { %v887_v35 = vcombine.low %v831_v26, %v835_v28  ;;  %v713_v37 = vmul.f32 %v1423_v56, %v697_v29  ;;  %v714_v6 = vmul.f32 %v1428_v61, %v698_v30  ;;  %v933_v58 = vmul.f32 %v1399_v7, %v917_v47 }
  0x70   :  { %v902_v44 = vmul.f32 %v886_v32, %v1520_v33  ;;  %v839_v45 = vrot.slane %v759_v34, %v1456_v2  ;;  %v843_v52 = vrot.slane %v763_v53, %v1456_v2  ;;  %v715_v55 = vmul.f32 %v1437_v20, %v699_v5 }
  0x71   :  { %v903_v57 = vmul.f32 %v887_v35, %v1528_v12  ;;  %v767_v40 = vrot.slane %v713_v37, %v1456_v2  ;;  %v771_v62 = vrot.slane %v713_v37, %v1466_v41  ;;  %v775_v0 = vrot.slane %v714_v6, %v1456_v2 }
  0x72   :  { %911 = vst [vmem:[#allocation7 + $0x50] sm:$0x77] %v902_v44  ;;  %v888_v38 = vcombine.low %v839_v45, %v843_v52  ;;  %v779_v7 = vrot.slane %v714_v6, %v1466_v41  ;;  %v783_v47 = vrot.slane %v715_v55, %v1456_v2  ;;  %v787_v9 = vrot.slane %v715_v55, %v1466_v41 }
  0x73   :  { %912 = vst [vmem:[#allocation7 + $0x58] sm:$0x77] %v903_v57  ;;  %v847_v10 = vrot.slane %v767_v40, %v1456_v2  ;;  %v851_v14 = vrot.slane %v771_v62, %v1456_v2  ;;  %v855_v15 = vrot.slane %v775_v0, %v1456_v2  ;;  %v952_v39 = vrot.slane %v933_v58, %v1459_v3 }
  0x74   :  { %v904_v16 = vmul.f32 %v888_v38, %v1540_v11  ;;  %v859_v17 = vrot.slane %v779_v7, %v1456_v2  ;;  %v863_v1 = vrot.slane %v783_v47, %v1456_v2  ;;  %v867_v19 = vrot.slane %v787_v9, %v1456_v2 }
  0x75   :  { %v889_v22 = vcombine.low %v847_v10, %v851_v14  ;;  %v956_v41 = vrot.slane %v933_v58, %v1469_v13  ;;  %v1032_v23 = vrot.slane %v952_v39, %v1459_v3  ;;  %v934_v59 = vmul.f32 %v1401_v8, %v918_v48 }
  0x76   :  { %913 = vst [vmem:[#allocation7 + $0x60] sm:$0x77] %v904_v16  ;;  %v890_v24 = vcombine.low %v855_v15, %v859_v17  ;;  %v891_v25 = vcombine.low %v863_v1, %v867_v19  ;;  %v919_v26 = vrot.slane %v1471_v43, 5  ;;  %v920_v28 = vrot.slane %v1477_v49, 5 }
  0x77   :  { %v905_v29 = vmul.f32 %v889_v22, %v1545_v18  ;;  %v1036_v2 = vrot.slane %v956_v41, %v1459_v3  ;;  %v960_v30 = vrot.slane %v934_v59, %v1459_v3  ;;  %v964_v32 = vrot.slane %v934_v59, %v1469_v13 }
  0x78   :  { %v906_v34 = vmul.f32 %v890_v24, %v1569_v50  ;;  %v907_v4 = vmul.f32 %v891_v25, %v1576_v63  ;;  %v935_v8 = vmul.f32 %v1405_v42, %v919_v26  ;;  %v936_v48 = vmul.f32 %v1411_v46, %v920_v28 }
  0x79   :  { %914 = vst [vmem:[#allocation7 + $0x68] sm:$0x77] %v905_v29  ;;  %v1109_v43 = vcombine.low %v1032_v23, %v1036_v2  ;;  %v1040_v49 = vrot.slane %v960_v30, %v1459_v3  ;;  %v1044_v53 = vrot.slane %v964_v32, %v1459_v3  ;;  %v921_v5 = vrot.slane %v1485_v54, 5 }
  0x7a   :  { %915 = vst [vmem:[#allocation7 + $0x70] sm:$0x77] %v906_v34  ;;  %916 = vst [vmem:[#allocation7 + $0x78] sm:$0x77] %v907_v4  ;;  %v968_v35 = vrot.slane %v935_v8, %v1459_v3  ;;  %v972_v37 = vrot.slane %v935_v8, %v1469_v13  ;;  %v976_v6 = vrot.slane %v936_v48, %v1459_v3  ;;  %v922_v45 = vrot.slane %v1493_v60, 5 }
  0x7b   :  { %v980_v42 = vrot.slane %v936_v48, %v1469_v13  ;;  %v1125_v46 = vmul.f32 %v1109_v43, %v1507_v21  ;;  %v1110_v58 = vcombine.low %v1040_v49, %v1044_v53  ;;  %v937_v44 = vmul.f32 %v1417_v51, %v921_v5 }
  0x7c   :  { %v1048_v52 = vrot.slane %v968_v35, %v1459_v3  ;;  %v1052_v54 = vrot.slane %v972_v37, %v1459_v3  ;;  %v1056_v55 = vrot.slane %v976_v6, %v1459_v3  ;;  %v938_v0 = vmul.f32 %v1423_v56, %v922_v45 }
  0x7d   :  { %v1060_v57 = vrot.slane %v980_v42, %v1459_v3  ;;  %1134 = vst [vmem:[#allocation7 + $0x80] sm:$0x77] %v1125_v46  ;;  %v1126_v40 = vmul.f32 %v1110_v58, %v1513_v27  ;;  %v984_v62 = vrot.slane %v937_v44, %v1459_v3  ;;  %v988_v21 = vrot.slane %v937_v44, %v1469_v13 }
  0x7e   :  { %v1111_v51 = vcombine.low %v1048_v52, %v1052_v54  ;;  %v923_v60 = vrot.slane %v1518_v31, 5  ;;  %v924_v7 = vrot.slane %v1525_v36, 5  ;;  %v992_v10 = vrot.slane %v938_v0, %v1459_v3 }
  0x7f   :  { %v1112_v38 = vcombine.low %v1056_v55, %v1060_v57  ;;  %1135 = vst [vmem:[#allocation7 + $0x88] sm:$0x77] %v1126_v40  ;;  %v1064_v47 = vrot.slane %v984_v62, %v1459_v3  ;;  %v1068_v9 = vrot.slane %v988_v21, %v1459_v3  ;;  %v996_v27 = vrot.slane %v938_v0, %v1469_v13 }
  0x80   :  { %v1127_v14 = vmul.f32 %v1111_v51, %v1520_v33  ;;  %v939_v56 = vmul.f32 %v1428_v61, %v923_v60  ;;  %v940_v39 = vmul.f32 %v1437_v20, %v924_v7  ;;  %v1072_v36 = vrot.slane %v992_v10, %v1459_v3 }
  0x81   :  { %v1128_v15 = vmul.f32 %v1112_v38, %v1528_v12  ;;  %v1113_v31 = vcombine.low %v1064_v47, %v1068_v9  ;;  %v1076_v16 = vrot.slane %v996_v27, %v1459_v3 }
  0x82   :  { %1136 = vst [vmem:[#allocation7 + $0x90] sm:$0x77] %v1127_v14  ;;  %v1000_v17 = vrot.slane %v939_v56, %v1459_v3  ;;  %v1004_v1 = vrot.slane %v939_v56, %v1469_v13  ;;  %v1008_v19 = vrot.slane %v940_v39, %v1459_v3  ;;  %v1012_v33 = vrot.slane %v940_v39, %v1469_v13 }
  0x83   :  { %1137 = vst [vmem:[#allocation7 + $0x98] sm:$0x77] %v1128_v15  ;;  %v1129_v12 = vmul.f32 %v1113_v31, %v1540_v11  ;;  %v1114_v61 = vcombine.low %v1072_v36, %v1076_v16 }
  0x84   :  { %v1080_v20 = vrot.slane %v1000_v17, %v1459_v3  ;;  %v1084_v22 = vrot.slane %v1004_v1, %v1459_v3  ;;  %v1088_v41 = vrot.slane %v1008_v19, %v1459_v3  ;;  %v1092_v23 = vrot.slane %v1012_v33, %v1459_v3 }
  0x85   :  { %1138 = vst [vmem:[#allocation7 + $0xa0] sm:$0x77] %v1129_v12  ;;  %v1130_v59 = vmul.f32 %v1114_v61, %v1545_v18 }
  0x86   :  { %v1115_v24 = vcombine.low %v1080_v20, %v1084_v22  ;;  %v1116_v25 = vcombine.low %v1088_v41, %v1092_v23 }
  0x87   :  { %1139 = vst [vmem:[#allocation7 + $0xa8] sm:$0x77] %v1130_v59 }
  0x88   :  { %v1131_v13 = vmul.f32 %v1115_v24, %v1569_v50  ;;  %v1132_v11 = vmul.f32 %v1116_v25, %v1576_v63 }
  0x8a   :  { %1140 = vst [vmem:[#allocation7 + $0xb0] sm:$0x77] %v1131_v13  ;;  %1141 = vst [vmem:[#allocation7 + $0xb8] sm:$0x77] %v1132_v11 }
  0x8b   :  { %1288 = shalt.err (!%p1285_p0)
}
  0x8c   :  { %s1306_s20 = smov 1024   ;;  %s1307_s21 = smov 64  }
  0x8d   :  { %1153 = dma.vmem_to_hbm [thread:$0]  %s1148_s1, 3072, %s1686_s2, [#allocation4], %s1306_s20, %s1306_s20, %s1307_s21  }
  0x8e   :  { %1301 = dma.done.wait [#allocation4], 3072  }
  0x8f   :  { %1302 = vsyncadd [#allocation4], 4294964224 }
  0x90   :  { %1157 = vsyncpa [#allocation3], 1 }
  0x91   :  { %1158 = vsyncpa [#allocation6], 1 }
  0x92   :  { %1159 = vsyncpa [#allocation4], 1 }

</bundles_post_ra>
